<compile_context>
chip_gen: v6e
topology: v6e:2x2x1
jax: 0.10.0
libtpu: 0.0.40
codegen_flags: <defaults>
</compile_context>

<pallas_src>
import jax
import jax.numpy as jnp
from jax.experimental import pallas as pl
from jax.experimental.pallas import tpu as pltpu


def _ffn_kernel(x_ref, w1_ref, w3_ref, w2_ref, o_ref, *maybe_acc):
    """One grid step: (m-tile i, hidden-chunk h).

    Computes gate/value for hidden chunk h with two (tm,dim)@(dim,th) matmuls,
    applies SiLU gating in f32, and accumulates the chunk's (tm,th)@(th,dim)
    contribution into the resident f32 accumulator (the output tile itself
    when the output dtype is f32).
    """
    acc_ref = maybe_acc[0] if maybe_acc else o_ref
    h = pl.program_id(1)

    @pl.when(h == 0)
    def _init():
        acc_ref[...] = jnp.zeros_like(acc_ref)

    x = x_ref[...].astype(w1_ref.dtype)

    # (tm, dim) @ (dim, th) -> (tm, th) on the MXU, f32 accumulation.
    g = jnp.dot(x, w1_ref[...], preferred_element_type=jnp.float32)
    v = jnp.dot(x, w3_ref[...], preferred_element_type=jnp.float32)
    hidden = (g * jax.nn.sigmoid(g)) * v              # SiLU(g) * v, in f32

    # (tm, th) @ (th, dim) -> (tm, dim), accumulated across hidden chunks.
    acc_ref[...] += jnp.dot(hidden.astype(w2_ref.dtype), w2_ref[...],
                            preferred_element_type=jnp.float32)

    if maybe_acc:
        @pl.when(h == pl.num_programs(1) - 1)
        def _finalize():
            o_ref[...] = acc_ref[...].astype(o_ref.dtype)


def _round_up(x, m):
    return (x + m - 1) // m * m


def _round_down(x, m):
    return max(m, (x // m) * m)


def _physical_vmem_bytes():
    try:
        return int(pltpu.get_tpu_info().vmem_capacity_bytes)
    except Exception:
        return 64 << 20                 # conservative fallback (v7x-sized)


def _th_options(hidden, target):
    """Ascending list of valid hidden-chunk sizes <= target (prefer 128-mult)."""
    target = max(1, min(target, hidden))
    opts = [d for d in range(128, target + 1, 128) if hidden % d == 0]
    if not opts:
        opts = [d for d in range(1, target + 1) if hidden % d == 0]
    return opts


def _vmem_estimate(tm, th, dim, x_b, w_b, out_b, f32_out):
    est = (2 * tm * dim * x_b            # x tile (double-buffered)
           + 2 * 2 * dim * th * w_b      # w1 + w3 chunks (double-buffered)
           + 2 * th * dim * w_b          # w2 chunk (double-buffered)
           + 2 * tm * dim * out_b        # output tile (double-buffered)
           + tm * 2 * th * 4             # g / v matmul results (f32)
           + tm * th * (4 + w_b))        # gated hidden f32 + cast copy
    if not f32_out:
        est += tm * dim * 4              # f32 accumulator scratch
    return est


def feed_forward(x, w1, w3, w2, *, tm=None, th=None):
    """x: (..., dim); w1, w3: (dim, hidden); w2: (hidden, dim)."""
    orig_shape = x.shape
    dim = orig_shape[-1]
    hidden = w1.shape[1]
    assert w1.shape == (dim, hidden) and w3.shape == (dim, hidden)
    assert w2.shape == (hidden, dim)

    x2d = x.reshape(-1, dim)
    M = x2d.shape[0]

    x_b = jnp.dtype(x.dtype).itemsize
    w_b = jnp.dtype(w1.dtype).itemsize
    out_dtype = x.dtype
    out_b = jnp.dtype(out_dtype).itemsize
    f32_out = jnp.dtype(out_dtype) == jnp.float32

    # ---- chip-aware tile targets & VMEM budget -----------------------------
    phys_vmem = _physical_vmem_bytes()
    if phys_vmem > (96 << 20):           # v5e / v6e class (128 MiB VMEM)
        tm_target, th_target = 1024, 512
        vmem_cap = min(phys_vmem - (16 << 20), 112 << 20)
    else:                                # v7x class (64 MiB VMEM)
        tm_target, th_target = 512, 512
        vmem_cap = max(phys_vmem - (8 << 20), 32 << 20)
    if tm is not None:
        tm_target = tm
    if th is not None:
        th_target = th

    # ---- tile selection -----------------------------------------------------
    m_align = {4: 8, 2: 16, 1: 32}.get(x_b, 8)
    tm = _round_down(min(tm_target, _round_up(M, m_align)), m_align)

    ths = _th_options(hidden, th_target)
    th_idx = len(ths) - 1
    th = ths[th_idx]

    # Shrink tiles until the (double-buffered + intermediates) estimate fits.
    while _vmem_estimate(tm, th, dim, x_b, w_b, out_b, f32_out) > vmem_cap:
        if tm > 256:
            tm = _round_down(tm // 2, m_align)
        elif th_idx > 0:
            th_idx -= 1
            th = ths[th_idx]
        elif tm > m_align:
            tm = _round_down(tm // 2, m_align)
        else:
            break

    n_m = pl.cdiv(M, tm)                 # ragged last M block handled by Pallas
    n_h = hidden // th
    grid = (n_m, n_h)

    scratch_shapes = [] if f32_out else [pltpu.VMEM((tm, dim), jnp.float32)]

    est = _vmem_estimate(tm, th, dim, x_b, w_b, out_b, f32_out)
    vmem_limit = int(min(vmem_cap, max(int(est * 1.25) + (2 << 20), 16 << 20)))

    cost = pl.CostEstimate(
        flops=int(6 * M * dim * hidden + 4 * M * hidden),
        transcendentals=int(M * hidden),
        bytes_accessed=int(M * dim * (x_b + out_b)
                           + n_m * (w1.size + w3.size + w2.size) * w_b),
    )

    out = pl.pallas_call(
        _ffn_kernel,
        out_shape=jax.ShapeDtypeStruct((M, dim), out_dtype),
        grid_spec=pltpu.PrefetchScalarGridSpec(
            num_scalar_prefetch=0,
            grid=grid,
            in_specs=[
                pl.BlockSpec((tm, dim), lambda i, h: (i, 0)),   # x tile
                pl.BlockSpec((dim, th), lambda i, h: (0, h)),   # w1 chunk
                pl.BlockSpec((dim, th), lambda i, h: (0, h)),   # w3 chunk
                pl.BlockSpec((th, dim), lambda i, h: (h, 0)),   # w2 chunk
            ],
            out_specs=pl.BlockSpec((tm, dim), lambda i, h: (i, 0)),
            scratch_shapes=scratch_shapes,
        ),
        compiler_params=pltpu.CompilerParams(
            dimension_semantics=("parallel", "arbitrary"),
            vmem_limit_bytes=vmem_limit,
        ),
        cost_estimate=cost,
    )(x2d, w1, w3, w2)

    return out.reshape(orig_shape)


def _hidden_dim(dim, multiple_of=256, ffn_dim_multiplier=None):
    hidden = 4 * dim
    hidden = int(2 * hidden / 3)
    if ffn_dim_multiplier is not None:
        hidden = int(ffn_dim_multiplier * hidden)
    return multiple_of * ((hidden + multiple_of - 1) // multiple_of)


def _reference(x, w1, w3, w2):
    g = x @ w1
    return (jax.nn.silu(g) * (x @ w3)) @ w2


if __name__ == "__main__":
    # Small ModelArgs-consistent shapes: dim=128, multiple_of=256 -> hidden=512.
    dim = 128
    hidden = _hidden_dim(dim)            # 512
    batch, seq = 2, 8

    key = jax.random.PRNGKey(0)
    kx, k1, k2, k3 = jax.random.split(key, 4)
    x = jax.random.normal(kx, (batch, seq, dim), dtype=jnp.float32)
    # weights stored (in, out) — transposed vs torch nn.Linear
    w1 = jax.random.normal(k1, (dim, hidden), dtype=jnp.float32) * 0.02
    w3 = jax.random.normal(k3, (dim, hidden), dtype=jnp.float32) * 0.02
    w2 = jax.random.normal(k2, (hidden, dim), dtype=jnp.float32) * 0.02

    # --- f32 path (accumulates directly into the output tile) ---------------
    out = jax.block_until_ready(feed_forward(x, w1, w3, w2))
    ref = _reference(x, w1, w3, w2)
    assert out.shape == (batch, seq, dim)
    assert jnp.allclose(out, ref, atol=1e-4, rtol=1e-4)

    # --- ragged-M path (M=5, not a multiple of the sublane tile) ------------
    x_odd = x[:1, :5]
    out_odd = jax.block_until_ready(feed_forward(x_odd, w1, w3, w2))
    ref_odd = _reference(x_odd, w1, w3, w2)
    assert out_odd.shape == (1, 5, dim)
    assert jnp.allclose(out_odd, ref_odd, atol=1e-4, rtol=1e-4)

    # --- bf16 path with forced small tiles: multiple hidden chunks (f32
    #     accumulator scratch + init/finalize) and a partial last M block ----
    xb = jax.random.normal(kx, (1, 24, dim), dtype=jnp.bfloat16)
    w1b, w3b, w2b = (a.astype(jnp.bfloat16) for a in (w1, w3, w2))
    out_bf16 = jax.block_until_ready(
        feed_forward(xb, w1b, w3b, w2b, tm=16, th=128))
    ref_bf16 = _reference(xb.astype(jnp.float32), w1b.astype(jnp.float32),
                          w3b.astype(jnp.float32), w2b.astype(jnp.float32))
    assert out_bf16.dtype == jnp.bfloat16
    assert jnp.allclose(out_bf16.astype(jnp.float32), ref_bf16,
                        atol=1e-2, rtol=1e-1)

    print("KERNEL_OK")
</pallas_src>

<mosaic_0001>
module attributes {stable_mosaic.version = 11 : i64} {
  func.func @_ffn_kernel(%arg0: i32, %arg1: i32, %arg2: memref<16x128xf32, #tpu.memory_space<vmem>>, %arg3: memref<128x512xf32, #tpu.memory_space<vmem>>, %arg4: memref<128x512xf32, #tpu.memory_space<vmem>>, %arg5: memref<512x128xf32, #tpu.memory_space<vmem>>, %arg6: memref<16x128xf32, #tpu.memory_space<vmem>>) attributes {dimension_semantics = [#tpu.dimension_semantics<parallel>, #tpu.dimension_semantics<arbitrary>], iteration_bounds = array<i64: 1, 1>, scalar_prefetch = 0 : i64, scratch_operands = 0 : i64, tpu.core_type = #tpu.core_type<tc>, window_params = [{transform_indices = @transform_0, window_bounds = array<i64: 16, 128>}, {transform_indices = @transform_1, window_bounds = array<i64: 128, 512>}, {transform_indices = @transform_2, window_bounds = array<i64: 128, 512>}, {transform_indices = @transform_3, window_bounds = array<i64: 512, 128>}, {transform_indices = @transform_4, window_bounds = array<i64: 16, 128>}]} {
    %c0_i32 = arith.constant 0 : i32
    %0 = arith.cmpi eq, %arg1, %c0_i32 : i32
    %1 = arith.extui %0 : i1 to i32
    %c0_i32_0 = arith.constant 0 : i32
    %2 = arith.cmpi ne, %1, %c0_i32_0 : i32
    scf.if %2 {
      %cst_15 = arith.constant 0.000000e+00 : f32
      %20 = vector.broadcast %cst_15 : f32 to vector<16x128xf32>
      %c0_16 = arith.constant 0 : index
      %c0_17 = arith.constant 0 : index
      %21 = vector.load %arg6[%c0_16, %c0_17] : memref<16x128xf32, #tpu.memory_space<vmem>>, vector<16x128xf32>
      tpu.vector_store %arg6[%c0_16, %c0_17], %20 {strides = array<i32>} : memref<16x128xf32, #tpu.memory_space<vmem>>, vector<16x128xf32>,
    } else {
    }
    %c0 = arith.constant 0 : index
    %c0_1 = arith.constant 0 : index
    %3 = vector.load %arg2[%c0, %c0_1] : memref<16x128xf32, #tpu.memory_space<vmem>>, vector<16x128xf32>
    %c0_2 = arith.constant 0 : index
    %c0_3 = arith.constant 0 : index
    %4 = vector.load %arg3[%c0_2, %c0_3] : memref<128x512xf32, #tpu.memory_space<vmem>>, vector<128x512xf32>
    %cst = arith.constant dense<0.000000e+00> : vector<16x512xf32>
    %5 = tpu.matmul %3, %4, %cst {dimension_numbers = #tpu.dot_dimension_numbers<[1], [0], [0], [1], [0, 0, 1, 1], [], []>} : vector<16x128xf32>, vector<128x512xf32>, vector<16x512xf32> -> vector<16x512xf32>
    %c0_4 = arith.constant 0 : index
    %c0_5 = arith.constant 0 : index
    %6 = vector.load %arg4[%c0_4, %c0_5] : memref<128x512xf32, #tpu.memory_space<vmem>>, vector<128x512xf32>
    %cst_6 = arith.constant dense<0.000000e+00> : vector<16x512xf32>
    %7 = tpu.matmul %3, %6, %cst_6 {dimension_numbers = #tpu.dot_dimension_numbers<[1], [0], [0], [1], [0, 0, 1, 1], [], []>} : vector<16x128xf32>, vector<128x512xf32>, vector<16x512xf32> -> vector<16x512xf32>
    %8 = arith.negf %5 : vector<16x512xf32>
    %9 = math.exp %8 : vector<16x512xf32>
    %cst_7 = arith.constant 1.000000e+00 : f32
    %10 = vector.broadcast %cst_7 : f32 to vector<16x512xf32>
    %11 = arith.addf %10, %9 : vector<16x512xf32>
    %12 = arith.divf %10, %11 : vector<16x512xf32>
    %13 = arith.mulf %5, %12 : vector<16x512xf32>
    %14 = arith.mulf %13, %7 : vector<16x512xf32>
    %c0_8 = arith.constant 0 : index
    %c0_9 = arith.constant 0 : index
    %15 = vector.load %arg6[%c0_8, %c0_9] : memref<16x128xf32, #tpu.memory_space<vmem>>, vector<16x128xf32>
    %c0_10 = arith.constant 0 : index
    %c0_11 = arith.constant 0 : index
    %16 = vector.load %arg5[%c0_10, %c0_11] : memref<512x128xf32, #tpu.memory_space<vmem>>, vector<512x128xf32>
    %cst_12 = arith.constant dense<0.000000e+00> : vector<16x128xf32>
    %17 = tpu.matmul %14, %16, %cst_12 {dimension_numbers = #tpu.dot_dimension_numbers<[1], [0], [0], [1], [0, 0, 1, 1], [], []>} : vector<16x512xf32>, vector<512x128xf32>, vector<16x128xf32> -> vector<16x128xf32>
    %18 = arith.addf %15, %17 : vector<16x128xf32>
    %c0_13 = arith.constant 0 : index
    %c0_14 = arith.constant 0 : index
    %19 = vector.load %arg6[%c0_13, %c0_14] : memref<16x128xf32, #tpu.memory_space<vmem>>, vector<16x128xf32>
    tpu.vector_store %arg6[%c0_13, %c0_14], %18 {strides = array<i32>} : memref<16x128xf32, #tpu.memory_space<vmem>>, vector<16x128xf32>,
    return
  }
  func.func @transform_0(%arg0: i32, %arg1: i32) -> (i32, i32) {
    %c0_i32 = arith.constant 0 : i32
    %c0_i32_0 = arith.constant 0 : i32
    return %arg0, %c0_i32 : i32, i32
  }
  func.func @transform_1(%arg0: i32, %arg1: i32) -> (i32, i32) {
    %c0_i32 = arith.constant 0 : i32
    %c0_i32_0 = arith.constant 0 : i32
    return %c0_i32, %arg1 : i32, i32
  }
  func.func @transform_2(%arg0: i32, %arg1: i32) -> (i32, i32) {
    %c0_i32 = arith.constant 0 : i32
    %c0_i32_0 = arith.constant 0 : i32
    return %c0_i32, %arg1 : i32, i32
  }
  func.func @transform_3(%arg0: i32, %arg1: i32) -> (i32, i32) {
    %c0_i32 = arith.constant 0 : i32
    %c0_i32_0 = arith.constant 0 : i32
    return %arg1, %c0_i32 : i32, i32
  }
  func.func @transform_4(%arg0: i32, %arg1: i32) -> (i32, i32) {
    %c0_i32 = arith.constant 0 : i32
    %c0_i32_0 = arith.constant 0 : i32
    return %arg0, %c0_i32 : i32, i32
  }
}

</mosaic_0001>

<bundles_post_ra>
// kernel: tpu_custom_call.1
= control target key start
LH: loop header
LB: loop body
LE: loop exit
PB: predicated region body
PF: predicated region fallthrough
CT: control target
= control target key end

     0   :  { %9 = vsyncpa [#allocation3], 0  ;;  %s1139_s0 = inlined_call_operand.hbm [shape: f32[16,128], index: 0, kind: input, shape index: {}]   ;;  %s1140_s1 = inlined_call_operand.hbm [shape: f32[128,512], index: 1, kind: input, shape index: {}]   ;;  %s1141_s2 = inlined_call_operand.hbm [shape: f32[128,512], index: 2, kind: input, shape index: {}]   ;;  %s1142_s3 = inlined_call_operand.hbm [shape: f32[512,128], index: 3, kind: input, shape index: {}]   ;;  %s1143_s4 = inlined_call_operand.hbm [shape: f32[16,128], index: 4, kind: output, shape index: {}]  }
   0x1   :  { %10 = vsyncpa [#allocation6], 0 }
   0x2   :  { %11 = vsyncpa [#allocation9], 0 }
   0x3   :  { %12 = vsyncpa [#allocation4], 0  ;;  %s1054_s15 = smov [#allocation5]  }
   0x4   :  { %s30_s16 = sshll.u32 %s1054_s15, 4  ;;  %s31_s16 = int_to_ptr.vmem [resolvable:$true] %s30_s16 }
   0x5   :  { %s954_s17 = scalar_lea.vmem %s31_s16, 8192  ;;  %p959_p1 = scmp.lt.s32.totalorder %s31_s16, %s31_s16 }
   0x6   :  { %p955_p0 = scmp.ne.s32.totalorder %s31_s16, %s954_s17  ;;  %p960_p2 = scmp.lt.s32.totalorder %s954_s17, %s954_s17 }
   0x8   :  { %p961_p3 = por %p960_p2, %p959_p1 }
   0xa   :  { %p962_p4 = pnand %p961_p3, %p955_p0 }
   0xc   :  { %965 = shalt.err (!%p962_p4)
}
   0xd   :  { %s1055_s18 = smov 512   ;;  %s1056_s19 = smov 32  }
   0xe   :  { %36 = dma.hbm_to_vmem [thread:$0]  %s1140_s1, 8192, %s31_s16, [#allocation6], %s1055_s18, %s1055_s18, %s1056_s19  }
   0xf   :  { %s1057_s22 = smov [#allocation2]  }
  0x10   :  { %s18_s23 = sshll.u32 %s1057_s22, 4  ;;  %s19_s23 = int_to_ptr.vmem [resolvable:$true] %s18_s23 }
  0x11   :  { %s974_s24 = scalar_lea.vmem %s19_s23, 256  ;;  %p979_p6 = scmp.lt.s32.totalorder %s19_s23, %s19_s23 }
  0x12   :  { %p975_p5 = scmp.ne.s32.totalorder %s19_s23, %s974_s24  ;;  %p980_p7 = scmp.lt.s32.totalorder %s974_s24, %s974_s24 }
  0x14   :  { %p981_p8 = por %p980_p7, %p979_p6 }
  0x16   :  { %p982_p9 = pnand %p981_p8, %p975_p5 }
  0x18   :  { %985 = shalt.err (!%p982_p9)
}
  0x19   :  { %s1058_s25 = smov 128   ;;  %s1059_s26 = smov 8  }
  0x1a   :  { %24 = dma.hbm_to_vmem [thread:$0]  %s1139_s0, 256, %s19_s23, [#allocation3], %s1058_s25, %s1058_s25, %s1059_s26  }
  0x1b   :  { %s1060_s1 = smov [#allocation7]   ;;  %s1061_s30 = smov [#allocation8]  }
  0x1c   :  { %s42_s29 = sshll.u32 %s1060_s1, 4  ;;  %s54_s5 = sshll.u32 %s1061_s30, 4  ;;  %s43_s29 = int_to_ptr.vmem [resolvable:$true] %s42_s29  ;;  %s55_s5 = int_to_ptr.vmem [resolvable:$true] %s54_s5 }
  0x1d   :  { %s994_s6 = scalar_lea.vmem %s43_s29, 8192  ;;  %p999_p11 = scmp.lt.s32.totalorder %s43_s29, %s43_s29 }
  0x1e   :  { %p995_p10 = scmp.ne.s32.totalorder %s43_s29, %s994_s6  ;;  %p1000_p12 = scmp.lt.s32.totalorder %s994_s6, %s994_s6 }
  0x20   :  { %p1001_p13 = por %p1000_p12, %p999_p11 }
  0x22   :  { %p1002_p0 = pnand %p1001_p13, %p995_p10 }
  0x24   :  { %1005 = shalt.err (!%p1002_p0)
}
  0x25   :  { %48 = dma.hbm_to_vmem [thread:$0]  %s1141_s2, 8192, %s43_s29, [#allocation6], %s1055_s18, %s1055_s18, %s1056_s19  }
  0x26   :  { %s1014_s0 = scalar_lea.vmem %s55_s5, 8192  ;;  %p1019_p2 = scmp.lt.s32.totalorder %s55_s5, %s55_s5 }
  0x27   :  { %p1015_p1 = scmp.ne.s32.totalorder %s55_s5, %s1014_s0  ;;  %p1020_p3 = scmp.lt.s32.totalorder %s1014_s0, %s1014_s0 }
  0x29   :  { %p1021_p4 = por %p1020_p3, %p1019_p2 }
  0x2b   :  { %p1022_p5 = pnand %p1021_p4, %p1015_p1 }
  0x2d   :  { %1025 = shalt.err (!%p1022_p5)
}
  0x2e   :  { %60 = dma.hbm_to_vmem [thread:$0]  %s1142_s3, 8192, %s55_s5, [#allocation9], %s1058_s25, %s1058_s25, %s1059_s26  }
  0x2f   :  { %1046 = dma.done.wait [#allocation3], 256  }
  0x30   :  { %1047 = vsyncadd [#allocation3], 4294967040 }
  0x31   :  { %1048 = dma.done.wait [#allocation6], 16384  }
  0x32   :  { %1049 = vsyncadd [#allocation6], 4294950912 }
  0x33   :  { %1050 = dma.done.wait [#allocation9], 8192  }
  0x34   :  { %1051 = vsyncadd [#allocation9], 4294959104  ;;  %v1062_v0 = vmov 0.0   ;;  %v142_v1 = vld [vmem:[#allocation5 + $0x1e8] sm:$0xff]  ;;  %v144_v2 = vld [vmem:[#allocation5 + $0x1f8] sm:$0xff]  ;;  %s1063_s2 = smov [#allocation10]  }
  0x35   :  { %209 = vmatprep.mubr.f32.mxu0 %v1062_v0  ;;  %286 = vmatprep.mubr.f32.mxu1 %v1062_v0  ;;  %v141_v3 = vld [vmem:[#allocation5 + $0x1e0] sm:$0xff]  ;;  %v143_v4 = vld [vmem:[#allocation5 + $0x1f0] sm:$0xff]  ;;  %v138_v5 = vld [vmem:[#allocation5 + $0x1c8] sm:$0xff]  ;;  %s806_s3 = sshll.u32 %s1063_s2, 4  ;;  %s807_s3 = int_to_ptr.vmem [resolvable:$true] %s806_s3 }
  0x36   :  { %145 = vmatprep.subr.mxu0 %v142_v1  ;;  %222 = vmatprep.subr.mxu1 %v144_v2  ;;  %v140_v6 = vld [vmem:[#allocation5 + $0x1d8] sm:$0xff]  ;;  %v137_v7 = vld [vmem:[#allocation5 + $0x1c0] sm:$0xff]  ;;  %v139_v8 = vld [vmem:[#allocation5 + $0x1d0] sm:$0xff]  ;;  %s1026_s11 = scalar_lea.vmem %s807_s3, 256  ;;  %p1031_p7 = scmp.lt.s32.totalorder %s807_s3, %s807_s3 }
  0x37   :  { %146 = vmatpush1.msra.mxu0 %v141_v3  ;;  %223 = vmatpush1.msra.mxu1 %v143_v4  ;;  %v134_v9 = vld [vmem:[#allocation5 + $0x1a8] sm:$0xff]  ;;  %v136_v10 = vld [vmem:[#allocation5 + $0x1b8] sm:$0xff]  ;;  %v133_v11 = vld [vmem:[#allocation5 + $0x1a0] sm:$0xff]  ;;  %p1027_p6 = scmp.ne.s32.totalorder %s807_s3, %s1026_s11  ;;  %p1032_p8 = scmp.lt.s32.totalorder %s1026_s11, %s1026_s11 }
  0x38   :  { %147 = vmatprep.subr.mxu0 %v138_v5  ;;  %224 = vmatprep.subr.mxu1 %v140_v6  ;;  %v135_v12 = vld [vmem:[#allocation5 + $0x1b0] sm:$0xff]  ;;  %v130_v13 = vld [vmem:[#allocation5 + $0x188] sm:$0xff]  ;;  %v132_v14 = vld [vmem:[#allocation5 + $0x198] sm:$0xff] }
  0x39   :  { %148 = vmatpush1.msra.mxu0 %v137_v7  ;;  %225 = vmatpush1.msra.mxu1 %v139_v8  ;;  %v129_v15 = vld [vmem:[#allocation5 + $0x180] sm:$0xff]  ;;  %v131_v16 = vld [vmem:[#allocation5 + $0x190] sm:$0xff]  ;;  %v126_v17 = vld [vmem:[#allocation5 + $0x168] sm:$0xff]  ;;  %p1033_p9 = por %p1032_p8, %p1031_p7 }
  0x3a   :  { %149 = vmatprep.subr.mxu0 %v134_v9  ;;  %226 = vmatprep.subr.mxu1 %v136_v10  ;;  %v128_v18 = vld [vmem:[#allocation5 + $0x178] sm:$0xff]  ;;  %v125_v19 = vld [vmem:[#allocation5 + $0x160] sm:$0xff]  ;;  %v127_v20 = vld [vmem:[#allocation5 + $0x170] sm:$0xff] }
  0x3b   :  { %150 = vmatpush1.msra.mxu0 %v133_v11  ;;  %227 = vmatpush1.msra.mxu1 %v135_v12  ;;  %v122_v21 = vld [vmem:[#allocation5 + $0x148] sm:$0xff]  ;;  %v124_v22 = vld [vmem:[#allocation5 + $0x158] sm:$0xff]  ;;  %v121_v23 = vld [vmem:[#allocation5 + $0x140] sm:$0xff]  ;;  %p1034_p10 = pnand %p1033_p9, %p1027_p6 }
  0x3c   :  { %151 = vmatprep.subr.mxu0 %v130_v13  ;;  %228 = vmatprep.subr.mxu1 %v132_v14  ;;  %v123_v24 = vld [vmem:[#allocation5 + $0x150] sm:$0xff]  ;;  %v118_v25 = vld [vmem:[#allocation5 + $0x128] sm:$0xff]  ;;  %v120_v26 = vld [vmem:[#allocation5 + $0x138] sm:$0xff] }
  0x3d   :  { %152 = vmatpush1.msra.mxu0 %v129_v15  ;;  %229 = vmatpush1.msra.mxu1 %v131_v16  ;;  %v117_v27 = vld [vmem:[#allocation5 + $0x120] sm:$0xff]  ;;  %v119_v28 = vld [vmem:[#allocation5 + $0x130] sm:$0xff]  ;;  %v114_v29 = vld [vmem:[#allocation5 + $0x108] sm:$0xff] }
  0x3e   :  { %153 = vmatprep.subr.mxu0 %v126_v17  ;;  %230 = vmatprep.subr.mxu1 %v128_v18  ;;  %v116_v30 = vld [vmem:[#allocation5 + $0x118] sm:$0xff]  ;;  %v113_v31 = vld [vmem:[#allocation5 + $0x100] sm:$0xff]  ;;  %v115_v32 = vld [vmem:[#allocation5 + $0x110] sm:$0xff] }
  0x3f   :  { %154 = vmatpush1.msra.mxu0 %v125_v19  ;;  %231 = vmatpush1.msra.mxu1 %v127_v20  ;;  %v110_v33 = vld [vmem:[#allocation5 + $0xe8] sm:$0xff]  ;;  %v112_v34 = vld [vmem:[#allocation5 + $0xf8] sm:$0xff]  ;;  %v109_v35 = vld [vmem:[#allocation5 + $0xe0] sm:$0xff] }
  0x40   :  { %155 = vmatprep.subr.mxu0 %v122_v21  ;;  %232 = vmatprep.subr.mxu1 %v124_v22  ;;  %v111_v36 = vld [vmem:[#allocation5 + $0xf0] sm:$0xff]  ;;  %v106_v37 = vld [vmem:[#allocation5 + $0xc8] sm:$0xff]  ;;  %v108_v38 = vld [vmem:[#allocation5 + $0xd8] sm:$0xff] }
  0x41   :  { %156 = vmatpush1.msra.mxu0 %v121_v23  ;;  %233 = vmatpush1.msra.mxu1 %v123_v24  ;;  %v105_v39 = vld [vmem:[#allocation5 + $0xc0] sm:$0xff]  ;;  %v107_v40 = vld [vmem:[#allocation5 + $0xd0] sm:$0xff]  ;;  %v102_v41 = vld [vmem:[#allocation5 + $0xa8] sm:$0xff] }
  0x42   :  { %157 = vmatprep.subr.mxu0 %v118_v25  ;;  %234 = vmatprep.subr.mxu1 %v120_v26  ;;  %v104_v42 = vld [vmem:[#allocation5 + $0xb8] sm:$0xff]  ;;  %v101_v43 = vld [vmem:[#allocation5 + $0xa0] sm:$0xff]  ;;  %v103_v44 = vld [vmem:[#allocation5 + $0xb0] sm:$0xff] }
  0x43   :  { %158 = vmatpush1.msra.mxu0 %v117_v27  ;;  %235 = vmatpush1.msra.mxu1 %v119_v28  ;;  %v98_v45 = vld [vmem:[#allocation5 + $0x88] sm:$0xff]  ;;  %v100_v46 = vld [vmem:[#allocation5 + $0x98] sm:$0xff]  ;;  %v97_v47 = vld [vmem:[#allocation5 + $0x80] sm:$0xff] }
  0x44   :  { %159 = vmatprep.subr.mxu0 %v114_v29  ;;  %236 = vmatprep.subr.mxu1 %v116_v30  ;;  %v99_v48 = vld [vmem:[#allocation5 + $0x90] sm:$0xff]  ;;  %v94_v49 = vld [vmem:[#allocation5 + $0x68] sm:$0xff]  ;;  %v96_v50 = vld [vmem:[#allocation5 + $0x78] sm:$0xff] }
  0x45   :  { %160 = vmatpush1.msra.mxu0 %v113_v31  ;;  %237 = vmatpush1.msra.mxu1 %v115_v32  ;;  %v93_v51 = vld [vmem:[#allocation5 + $0x60] sm:$0xff]  ;;  %v95_v52 = vld [vmem:[#allocation5 + $0x70] sm:$0xff]  ;;  %v90_v53 = vld [vmem:[#allocation5 + $0x48] sm:$0xff] }
  0x46   :  { %161 = vmatprep.subr.mxu0 %v110_v33  ;;  %238 = vmatprep.subr.mxu1 %v112_v34  ;;  %v92_v54 = vld [vmem:[#allocation5 + $0x58] sm:$0xff]  ;;  %v89_v55 = vld [vmem:[#allocation5 + $0x40] sm:$0xff]  ;;  %v91_v56 = vld [vmem:[#allocation5 + $0x50] sm:$0xff] }
  0x47   :  { %162 = vmatpush1.msra.mxu0 %v109_v35  ;;  %239 = vmatpush1.msra.mxu1 %v111_v36  ;;  %v86_v57 = vld [vmem:[#allocation5 + $0x28] sm:$0xff]  ;;  %v88_v58 = vld [vmem:[#allocation5 + $0x38] sm:$0xff]  ;;  %v85_v59 = vld [vmem:[#allocation5 + $0x20] sm:$0xff] }
  0x48   :  { %163 = vmatprep.subr.mxu0 %v106_v37  ;;  %240 = vmatprep.subr.mxu1 %v108_v38  ;;  %v87_v60 = vld [vmem:[#allocation5 + $0x30] sm:$0xff]  ;;  %v82_v61 = vld [vmem:[#allocation5 + $0x8] sm:$0xff]  ;;  %v84_v62 = vld [vmem:[#allocation5 + $0x18] sm:$0xff] }
  0x49   :  { %164 = vmatpush1.msra.mxu0 %v105_v39  ;;  %241 = vmatpush1.msra.mxu1 %v107_v40  ;;  %v81_v63 = vld [vmem:[#allocation5] sm:$0xff]  ;;  %v83_v1 = vld [vmem:[#allocation5 + $0x10] sm:$0xff]  ;;  %v360_v3 = vld [vmem:[#allocation7 + $0x1e8] sm:$0xff] }
  0x4a   :  { %165 = vmatprep.subr.mxu0 %v102_v41  ;;  %242 = vmatprep.subr.mxu1 %v104_v42  ;;  %v1115_v2 = vld [vmem:[#allocation2] sm:$0xff]  ;;  %v362_v4 = vld [vmem:[#allocation7 + $0x1f8] sm:$0xff]  ;;  %v359_v5 = vld [vmem:[#allocation7 + $0x1e0] sm:$0xff] }
  0x4b   :  { %166 = vmatpush1.msra.mxu0 %v101_v43  ;;  %243 = vmatpush1.msra.mxu1 %v103_v44  ;;  %v361_v6 = vld [vmem:[#allocation7 + $0x1f0] sm:$0xff]  ;;  %v356_v7 = vld [vmem:[#allocation7 + $0x1c8] sm:$0xff]  ;;  %v358_v8 = vld [vmem:[#allocation7 + $0x1d8] sm:$0xff] }
  0x4c   :  { %167 = vmatprep.subr.mxu0 %v98_v45  ;;  %244 = vmatprep.subr.mxu1 %v100_v46  ;;  %v355_v9 = vld [vmem:[#allocation7 + $0x1c0] sm:$0xff]  ;;  %v357_v10 = vld [vmem:[#allocation7 + $0x1d0] sm:$0xff]  ;;  %v1119_v11 = vld [vmem:[#allocation2 + $0x8] sm:$0xff] }
  0x4d   :  { %168 = vmatpush1.msra.mxu0 %v97_v47  ;;  %245 = vmatpush1.msra.mxu1 %v99_v48  ;;  %v352_v12 = vld [vmem:[#allocation7 + $0x1a8] sm:$0xff]  ;;  %v354_v13 = vld [vmem:[#allocation7 + $0x1b8] sm:$0xff]  ;;  %v351_v14 = vld [vmem:[#allocation7 + $0x1a0] sm:$0xff] }
  0x4e   :  { %169 = vmatprep.subr.mxu0 %v94_v49  ;;  %246 = vmatprep.subr.mxu1 %v96_v50  ;;  %v353_v15 = vld [vmem:[#allocation7 + $0x1b0] sm:$0xff]  ;;  %v348_v16 = vld [vmem:[#allocation7 + $0x188] sm:$0xff]  ;;  %v350_v17 = vld [vmem:[#allocation7 + $0x198] sm:$0xff] }
  0x4f   :  { %170 = vmatpush1.msra.mxu0 %v93_v51  ;;  %247 = vmatpush1.msra.mxu1 %v95_v52  ;;  %v347_v18 = vld [vmem:[#allocation7 + $0x180] sm:$0xff]  ;;  %v349_v19 = vld [vmem:[#allocation7 + $0x190] sm:$0xff]  ;;  %v344_v20 = vld [vmem:[#allocation7 + $0x168] sm:$0xff] }
  0x50   :  { %171 = vmatprep.subr.mxu0 %v90_v53  ;;  %248 = vmatprep.subr.mxu1 %v92_v54  ;;  %v346_v21 = vld [vmem:[#allocation7 + $0x178] sm:$0xff]  ;;  %v343_v22 = vld [vmem:[#allocation7 + $0x160] sm:$0xff]  ;;  %v345_v23 = vld [vmem:[#allocation7 + $0x170] sm:$0xff] }
  0x51   :  { %172 = vmatpush1.msra.mxu0 %v89_v55  ;;  %249 = vmatpush1.msra.mxu1 %v91_v56  ;;  %v340_v24 = vld [vmem:[#allocation7 + $0x148] sm:$0xff]  ;;  %v342_v25 = vld [vmem:[#allocation7 + $0x158] sm:$0xff]  ;;  %v339_v26 = vld [vmem:[#allocation7 + $0x140] sm:$0xff] }
  0x52   :  { %173 = vmatprep.subr.mxu0 %v86_v57  ;;  %250 = vmatprep.subr.mxu1 %v88_v58  ;;  %v341_v27 = vld [vmem:[#allocation7 + $0x150] sm:$0xff]  ;;  %v336_v28 = vld [vmem:[#allocation7 + $0x128] sm:$0xff]  ;;  %v338_v29 = vld [vmem:[#allocation7 + $0x138] sm:$0xff] }
  0x53   :  { %174 = vmatpush1.msra.mxu0 %v85_v59  ;;  %251 = vmatpush1.msra.mxu1 %v87_v60  ;;  %v335_v30 = vld [vmem:[#allocation7 + $0x120] sm:$0xff]  ;;  %v337_v31 = vld [vmem:[#allocation7 + $0x130] sm:$0xff]  ;;  %v332_v32 = vld [vmem:[#allocation7 + $0x108] sm:$0xff] }
  0x54   :  { %175 = vmatprep.subr.mxu0 %v82_v61  ;;  %252 = vmatprep.subr.mxu1 %v84_v62  ;;  %v334_v33 = vld [vmem:[#allocation7 + $0x118] sm:$0xff]  ;;  %v331_v34 = vld [vmem:[#allocation7 + $0x100] sm:$0xff]  ;;  %v333_v35 = vld [vmem:[#allocation7 + $0x110] sm:$0xff] }
  0x55   :  { %176 = vmatpush1.msra.mxu0 %v81_v63  ;;  %253 = vmatpush1.msra.mxu1 %v83_v1  ;;  %v328_v36 = vld [vmem:[#allocation7 + $0xe8] sm:$0xff]  ;;  %v330_v37 = vld [vmem:[#allocation7 + $0xf8] sm:$0xff]  ;;  %v327_v38 = vld [vmem:[#allocation7 + $0xe0] sm:$0xff] }
  0x56   :  { %210 = vmatmul.mubr.f32.vlgmr.msra.gmra.mxu0 %v1115_v2  ;;  %287 = vmatmul.mubr.f32.vlgmr.msra.gmra.mxu1 %v1115_v2  ;;  %v329_v39 = vld [vmem:[#allocation7 + $0xf0] sm:$0xff]  ;;  %v324_v40 = vld [vmem:[#allocation7 + $0xc8] sm:$0xff]  ;;  %v326_v41 = vld [vmem:[#allocation7 + $0xd8] sm:$0xff] }
  0x57   :  { %363 = vmatprep.subr.mxu0 %v360_v3  ;;  %440 = vmatprep.subr.mxu1 %v362_v4  ;;  %v323_v42 = vld [vmem:[#allocation7 + $0xc0] sm:$0xff]  ;;  %v325_v43 = vld [vmem:[#allocation7 + $0xd0] sm:$0xff]  ;;  %v320_v44 = vld [vmem:[#allocation7 + $0xa8] sm:$0xff] }
  0x58   :  { %364 = vmatpush1.msra.mxu0 %v359_v5  ;;  %441 = vmatpush1.msra.mxu1 %v361_v6  ;;  %v322_v45 = vld [vmem:[#allocation7 + $0xb8] sm:$0xff]  ;;  %v319_v46 = vld [vmem:[#allocation7 + $0xa0] sm:$0xff]  ;;  %v321_v47 = vld [vmem:[#allocation7 + $0xb0] sm:$0xff] }
  0x59   :  { %365 = vmatprep.subr.mxu0 %v356_v7  ;;  %442 = vmatprep.subr.mxu1 %v358_v8  ;;  %v316_v48 = vld [vmem:[#allocation7 + $0x88] sm:$0xff]  ;;  %v318_v49 = vld [vmem:[#allocation7 + $0x98] sm:$0xff]  ;;  %v315_v50 = vld [vmem:[#allocation7 + $0x80] sm:$0xff] }
  0x5a   :  { %215 = vmatprep.mubr.f32.mxu0 %v1062_v0  ;;  %292 = vmatprep.mubr.f32.mxu1 %v1062_v0  ;;  %v317_v51 = vld [vmem:[#allocation7 + $0x90] sm:$0xff]  ;;  %v312_v52 = vld [vmem:[#allocation7 + $0x68] sm:$0xff]  ;;  %v314_v53 = vld [vmem:[#allocation7 + $0x78] sm:$0xff] }
  0x5b   :  { %366 = vmatpush1.msra.mxu0 %v355_v9  ;;  %443 = vmatpush1.msra.mxu1 %v357_v10  ;;  %v311_v54 = vld [vmem:[#allocation7 + $0x60] sm:$0xff]  ;;  %v313_v55 = vld [vmem:[#allocation7 + $0x70] sm:$0xff]  ;;  %v308_v56 = vld [vmem:[#allocation7 + $0x48] sm:$0xff] }
  0x5c   :  { %216 = vmatmul.mubr.f32.gmra.mxu0 %v1119_v11  ;;  %293 = vmatmul.mubr.f32.gmra.mxu1 %v1119_v11  ;;  %v310_v57 = vld [vmem:[#allocation7 + $0x58] sm:$0xff]  ;;  %v307_v58 = vld [vmem:[#allocation7 + $0x40] sm:$0xff]  ;;  %v309_v59 = vld [vmem:[#allocation7 + $0x50] sm:$0xff] }
  0x5d   :  { %367 = vmatprep.subr.mxu0 %v352_v12  ;;  %444 = vmatprep.subr.mxu1 %v354_v13  ;;  %v304_v60 = vld [vmem:[#allocation7 + $0x28] sm:$0xff]  ;;  %v306_v61 = vld [vmem:[#allocation7 + $0x38] sm:$0xff]  ;;  %v303_v62 = vld [vmem:[#allocation7 + $0x20] sm:$0xff] }
  0x5e   :  { %368 = vmatpush1.msra.mxu0 %v351_v14  ;;  %445 = vmatpush1.msra.mxu1 %v353_v15  ;;  %v305_v63 = vld [vmem:[#allocation7 + $0x30] sm:$0xff]  ;;  %v300_v1 = vld [vmem:[#allocation7 + $0x8] sm:$0xff]  ;;  %v302_v3 = vld [vmem:[#allocation7 + $0x18] sm:$0xff] }
  0x5f   :  { %369 = vmatprep.subr.mxu0 %v348_v16  ;;  %446 = vmatprep.subr.mxu1 %v350_v17  ;;  %v299_v4 = vld [vmem:[#allocation7] sm:$0xff]  ;;  %v301_v5 = vld [vmem:[#allocation7 + $0x10] sm:$0xff]  ;;  %v614_v6 = vld [vmem:[#allocation8 + $0xf8] sm:$0xff] }
  0x60   :  { %370 = vmatpush1.msra.mxu0 %v347_v18  ;;  %447 = vmatpush1.msra.mxu1 %v349_v19  ;;  %v646_v7 = vld [vmem:[#allocation8 + $0x1f8] sm:$0xff]  ;;  %v613_v10 = vld [vmem:[#allocation8 + $0xf0] sm:$0xff]  ;;  %v644_v14 = vld [vmem:[#allocation8 + $0x1e8] sm:$0xff] }
  0x61   :  { %371 = vmatprep.subr.mxu0 %v344_v20  ;;  %448 = vmatprep.subr.mxu1 %v346_v21  ;;  %v598_v8 = vld [vmem:[#allocation8 + $0x78] sm:$0xff]  ;;  %v645_v12 = vld [vmem:[#allocation8 + $0x1f0] sm:$0xff]  ;;  %v628_v15 = vld [vmem:[#allocation8 + $0x168] sm:$0xff] }
  0x62   :  { %372 = vmatpush1.msra.mxu0 %v343_v22  ;;  %449 = vmatpush1.msra.mxu1 %v345_v23  ;;  %v630_v9 = vld [vmem:[#allocation8 + $0x178] sm:$0xff]  ;;  %v629_v13 = vld [vmem:[#allocation8 + $0x170] sm:$0xff]  ;;  %v611_v16 = vld [vmem:[#allocation8 + $0xe0] sm:$0xff] }
  0x63   :  { %373 = vmatprep.subr.mxu0 %v340_v24  ;;  %450 = vmatprep.subr.mxu1 %v342_v25  ;;  %v643_v17 = vld [vmem:[#allocation8 + $0x1e0] sm:$0xff]  ;;  %v610_v20 = vld [vmem:[#allocation8 + $0xd8] sm:$0xff]  ;;  %v609_v24 = vld [vmem:[#allocation8 + $0xd0] sm:$0xff] }
  0x64   :  { %374 = vmatpush1.msra.mxu0 %v339_v26  ;;  %451 = vmatpush1.msra.mxu1 %v341_v27  ;;  %v595_v18 = vld [vmem:[#allocation8 + $0x60] sm:$0xff]  ;;  %v642_v21 = vld [vmem:[#allocation8 + $0x1d8] sm:$0xff]  ;;  %v641_v25 = vld [vmem:[#allocation8 + $0x1d0] sm:$0xff] }
  0x65   :  { %375 = vmatprep.subr.mxu0 %v336_v28  ;;  %452 = vmatprep.subr.mxu1 %v338_v29  ;;  %v627_v19 = vld [vmem:[#allocation8 + $0x160] sm:$0xff]  ;;  %v594_v22 = vld [vmem:[#allocation8 + $0x58] sm:$0xff]  ;;  %v593_v26 = vld [vmem:[#allocation8 + $0x50] sm:$0xff] }
  0x66   :  { %376 = vmatpush1.msra.mxu0 %v335_v30  ;;  %453 = vmatpush1.msra.mxu1 %v337_v31  ;;  %v626_v23 = vld [vmem:[#allocation8 + $0x158] sm:$0xff]  ;;  %v625_v27 = vld [vmem:[#allocation8 + $0x150] sm:$0xff]  ;;  %v608_v28 = vld [vmem:[#allocation8 + $0xc8] sm:$0xff] }
  0x67   :  { %377 = vmatprep.subr.mxu0 %v332_v32  ;;  %454 = vmatprep.subr.mxu1 %v334_v33  ;;  %v640_v29 = vld [vmem:[#allocation8 + $0x1c8] sm:$0xff]  ;;  %v607_v32 = vld [vmem:[#allocation8 + $0xc0] sm:$0xff] }
  0x68   :  { %378 = vmatpush1.msra.mxu0 %v331_v34  ;;  %455 = vmatpush1.msra.mxu1 %v333_v35  ;;  %v592_v30 = vld [vmem:[#allocation8 + $0x48] sm:$0xff]  ;;  %v639_v33 = vld [vmem:[#allocation8 + $0x1c0] sm:$0xff] }
  0x69   :  { %379 = vmatprep.subr.mxu0 %v328_v36  ;;  %456 = vmatprep.subr.mxu1 %v330_v37  ;;  %v624_v31 = vld [vmem:[#allocation8 + $0x148] sm:$0xff]  ;;  %v591_v34 = vld [vmem:[#allocation8 + $0x40] sm:$0xff]  ;;  %v606_v36 = vld [vmem:[#allocation8 + $0xb8] sm:$0xff] }
  0x6a   :  { %380 = vmatpush1.msra.mxu0 %v327_v38  ;;  %457 = vmatpush1.msra.mxu1 %v329_v39  ;;  %v623_v35 = vld [vmem:[#allocation8 + $0x140] sm:$0xff]  ;;  %v638_v37 = vld [vmem:[#allocation8 + $0x1b8] sm:$0xff] }
  0x6b   :  { %381 = vmatprep.subr.mxu0 %v324_v40  ;;  %458 = vmatprep.subr.mxu1 %v326_v41  ;;  %v590_v38 = vld [vmem:[#allocation8 + $0x38] sm:$0xff]  ;;  %v605_v40 = vld [vmem:[#allocation8 + $0xb0] sm:$0xff] }
  0x6c   :  { %382 = vmatpush1.msra.mxu0 %v323_v42  ;;  %459 = vmatpush1.msra.mxu1 %v325_v43  ;;  %v622_v39 = vld [vmem:[#allocation8 + $0x138] sm:$0xff]  ;;  %v637_v41 = vld [vmem:[#allocation8 + $0x1b0] sm:$0xff] }
  0x6d   :  { %383 = vmatprep.subr.mxu0 %v320_v44  ;;  %460 = vmatprep.subr.mxu1 %v322_v45  ;;  %v589_v42 = vld [vmem:[#allocation8 + $0x30] sm:$0xff]  ;;  %v604_v44 = vld [vmem:[#allocation8 + $0xa8] sm:$0xff] }
  0x6e   :  { %384 = vmatpush1.msra.mxu0 %v319_v46  ;;  %461 = vmatpush1.msra.mxu1 %v321_v47  ;;  %v621_v43 = vld [vmem:[#allocation8 + $0x130] sm:$0xff]  ;;  %v636_v45 = vld [vmem:[#allocation8 + $0x1a8] sm:$0xff] }
  0x6f   :  { %385 = vmatprep.subr.mxu0 %v316_v48  ;;  %462 = vmatprep.subr.mxu1 %v318_v49  ;;  %v588_v46 = vld [vmem:[#allocation8 + $0x28] sm:$0xff]  ;;  %v603_v48 = vld [vmem:[#allocation8 + $0xa0] sm:$0xff] }
  0x70   :  { %386 = vmatpush1.msra.mxu0 %v315_v50  ;;  %463 = vmatpush1.msra.mxu1 %v317_v51  ;;  %v620_v47 = vld [vmem:[#allocation8 + $0x128] sm:$0xff]  ;;  %v635_v49 = vld [vmem:[#allocation8 + $0x1a0] sm:$0xff] }
  0x71   :  { %387 = vmatprep.subr.mxu0 %v312_v52  ;;  %464 = vmatprep.subr.mxu1 %v314_v53  ;;  %v587_v50 = vld [vmem:[#allocation8 + $0x20] sm:$0xff]  ;;  %v602_v52 = vld [vmem:[#allocation8 + $0x98] sm:$0xff] }
  0x72   :  { %388 = vmatpush1.msra.mxu0 %v311_v54  ;;  %465 = vmatpush1.msra.mxu1 %v313_v55  ;;  %v619_v51 = vld [vmem:[#allocation8 + $0x120] sm:$0xff]  ;;  %v634_v53 = vld [vmem:[#allocation8 + $0x198] sm:$0xff] }
  0x73   :  { %389 = vmatprep.subr.mxu0 %v308_v56  ;;  %466 = vmatprep.subr.mxu1 %v310_v57  ;;  %v586_v54 = vld [vmem:[#allocation8 + $0x18] sm:$0xff]  ;;  %v601_v56 = vld [vmem:[#allocation8 + $0x90] sm:$0xff] }
  0x74   :  { %390 = vmatpush1.msra.mxu0 %v307_v58  ;;  %467 = vmatpush1.msra.mxu1 %v309_v59  ;;  %v618_v55 = vld [vmem:[#allocation8 + $0x118] sm:$0xff]  ;;  %v633_v57 = vld [vmem:[#allocation8 + $0x190] sm:$0xff] }
  0x75   :  { %391 = vmatprep.subr.mxu0 %v304_v60  ;;  %468 = vmatprep.subr.mxu1 %v306_v61  ;;  %v585_v58 = vld [vmem:[#allocation8 + $0x10] sm:$0xff]  ;;  %v600_v60 = vld [vmem:[#allocation8 + $0x88] sm:$0xff] }
  0x76   :  { %392 = vmatpush1.msra.mxu0 %v303_v62  ;;  %469 = vmatpush1.msra.mxu1 %v305_v63  ;;  %v617_v59 = vld [vmem:[#allocation8 + $0x110] sm:$0xff]  ;;  %v632_v61 = vld [vmem:[#allocation8 + $0x188] sm:$0xff] }
  0x77   :  { %393 = vmatprep.subr.mxu0 %v300_v1  ;;  %470 = vmatprep.subr.mxu1 %v302_v3  ;;  %v584_v62 = vld [vmem:[#allocation8 + $0x8] sm:$0xff]  ;;  %v599_v1 = vld [vmem:[#allocation8 + $0x80] sm:$0xff] }
  0x78   :  { %394 = vmatpush1.msra.mxu0 %v299_v4  ;;  %427 = vmatprep.mubr.f32.mxu0 %v1062_v0  ;;  %v616_v63 = vld [vmem:[#allocation8 + $0x108] sm:$0xff]  ;;  %v631_v3 = vld [vmem:[#allocation8 + $0x180] sm:$0xff] }
  0x79   :  { %471 = vmatpush1.msra.mxu1 %v301_v5  ;;  %504 = vmatprep.mubr.f32.mxu1 %v1062_v0  ;;  %v583_v4 = vld [vmem:[#allocation8] sm:$0xff] }
  0x7a   :  { %428 = vmatmul.mubr.f32.vlgmr.msra.gmra.mxu0 %v1115_v2  ;;  %505 = vmatmul.mubr.f32.vlgmr.msra.gmra.mxu1 %v1115_v2  ;;  %v597_v2 = vld [vmem:[#allocation8 + $0x70] sm:$0xff]  ;;  %v615_v5 = vld [vmem:[#allocation8 + $0x100] sm:$0xff] }
  0x7b   :  { %433 = vmatprep.mubr.f32.mxu0 %v1062_v0  ;;  %510 = vmatprep.mubr.f32.mxu1 %v1062_v0  ;;  %v612_v0 = vld [vmem:[#allocation8 + $0xe8] sm:$0xff] }
  0x7c   :  { %828 = vmatprep.subr.mxu0 %v614_v6  ;;  %866 = vmatprep.subr.mxu1 %v646_v7 }
  0x7d   :  { %829 = vmatpush3.msra.mxu0 %v598_v8  ;;  %867 = vmatpush3.msra.mxu1 %v630_v9 }
  0x7e   :  { %434 = vmatmul.mubr.f32.gmra.mxu0 %v1119_v11  ;;  %511 = vmatmul.mubr.f32.gmra.mxu1 %v1119_v11  ;;  %v596_v11 = vld [vmem:[#allocation8 + $0x68] sm:$0xff] }
  0x7f   :  { %830 = vmatprep.subr.mxu0 %v613_v10  ;;  %868 = vmatprep.subr.mxu1 %v645_v12 }
  0x80   :  { %831 = vmatpush3.msra.mxu0 %v597_v2  ;;  %869 = vmatpush3.msra.mxu1 %v629_v13 }
  0x81   :  { %832 = vmatprep.subr.mxu0 %v612_v0  ;;  %870 = vmatprep.subr.mxu1 %v644_v14 }
  0x82   :  { %833 = vmatpush3.msra.mxu0 %v596_v11  ;;  %871 = vmatpush3.msra.mxu1 %v628_v15 }
  0x83   :  { %834 = vmatprep.subr.mxu0 %v611_v16  ;;  %872 = vmatprep.subr.mxu1 %v643_v17 }
  0x84   :  { %835 = vmatpush3.msra.mxu0 %v595_v18  ;;  %873 = vmatpush3.msra.mxu1 %v627_v19 }
  0x85   :  { %836 = vmatprep.subr.mxu0 %v610_v20  ;;  %874 = vmatprep.subr.mxu1 %v642_v21 }
  0x86   :  { %837 = vmatpush3.msra.mxu0 %v594_v22  ;;  %875 = vmatpush3.msra.mxu1 %v626_v23 }
  0x87   :  { %838 = vmatprep.subr.mxu0 %v609_v24  ;;  %876 = vmatprep.subr.mxu1 %v641_v25 }
  0x88   :  { %839 = vmatpush3.msra.mxu0 %v593_v26  ;;  %877 = vmatpush3.msra.mxu1 %v625_v27 }
  0x89   :  { %840 = vmatprep.subr.mxu0 %v608_v28  ;;  %878 = vmatprep.subr.mxu1 %v640_v29 }
  0x8a   :  { %841 = vmatpush3.msra.mxu0 %v592_v30  ;;  %879 = vmatpush3.msra.mxu1 %v624_v31 }
  0x8b   :  { %842 = vmatprep.subr.mxu0 %v607_v32  ;;  %880 = vmatprep.subr.mxu1 %v639_v33 }
  0x8c   :  { %843 = vmatpush3.msra.mxu0 %v591_v34  ;;  %881 = vmatpush3.msra.mxu1 %v623_v35 }
  0x8d   :  { %844 = vmatprep.subr.mxu0 %v606_v36  ;;  %882 = vmatprep.subr.mxu1 %v638_v37 }
  0x8e   :  { %845 = vmatpush3.msra.mxu0 %v590_v38  ;;  %883 = vmatpush3.msra.mxu1 %v622_v39 }
  0x8f   :  { %846 = vmatprep.subr.mxu0 %v605_v40  ;;  %884 = vmatprep.subr.mxu1 %v637_v41 }
  0x90   :  { %847 = vmatpush3.msra.mxu0 %v589_v42  ;;  %885 = vmatpush3.msra.mxu1 %v621_v43 }
  0x91   :  { %848 = vmatprep.subr.mxu0 %v604_v44  ;;  %886 = vmatprep.subr.mxu1 %v636_v45 }
  0x92   :  { %849 = vmatpush3.msra.mxu0 %v588_v46  ;;  %887 = vmatpush3.msra.mxu1 %v620_v47 }
  0x93   :  { %850 = vmatprep.subr.mxu0 %v603_v48  ;;  %888 = vmatprep.subr.mxu1 %v635_v49 }
  0x94   :  { %851 = vmatpush3.msra.mxu0 %v587_v50  ;;  %889 = vmatpush3.msra.mxu1 %v619_v51 }
  0x95   :  { %852 = vmatprep.subr.mxu0 %v602_v52  ;;  %890 = vmatprep.subr.mxu1 %v634_v53 }
  0x96   :  { %853 = vmatpush3.msra.mxu0 %v586_v54  ;;  %891 = vmatpush3.msra.mxu1 %v618_v55 }
  0x97   :  { %854 = vmatprep.subr.mxu0 %v601_v56  ;;  %892 = vmatprep.subr.mxu1 %v633_v57 }
  0x98   :  { %855 = vmatpush3.msra.mxu0 %v585_v58  ;;  %893 = vmatpush3.msra.mxu1 %v617_v59 }
  0x99   :  { %856 = vmatprep.subr.mxu0 %v600_v60  ;;  %894 = vmatprep.subr.mxu1 %v632_v61 }
  0x9a   :  { %857 = vmatpush3.msra.mxu0 %v584_v62  ;;  %895 = vmatpush3.msra.mxu1 %v616_v63 }
  0x9b   :  { %858 = vmatprep.subr.mxu0 %v599_v1  ;;  %896 = vmatprep.subr.mxu1 %v631_v3 }
  0x9c   :  { %859 = vmatpush3.msra.mxu0 %v583_v4  ;;  %897 = vmatpush3.msra.mxu1 %v615_v5 }
 0x116   :  { %v211_v6 = vpop.f32.mrf.mxu0  ;;  %v288_v7 = vpop.f32.mrf.mxu1 }
 0x117   :  { %v820_v8 = vmul.f32 -1.442695, %v211_v6  ;;  %v822_v9 = vmul.f32 -1.442695, %v288_v7 }
 0x118   :  { %v213_v10 = vpop.f32.mrf.mxu0  ;;  %v290_v12 = vpop.f32.mrf.mxu1 }
 0x119   :  { %914 = vpow2.f32 %v820_v8  ;;  %v821_v2 = vmul.f32 -1.442695, %v213_v10  ;;  %v823_v13 = vmul.f32 -1.442695, %v290_v12 }
 0x11a   :  { %916 = vpow2.f32 %v822_v9 }
 0x11b   :  { %918 = vpow2.f32 %v821_v2 }
 0x11c   :  { %920 = vpow2.f32 %v823_v13  ;;  %v217_v0 = vpop.f32.mrf.mxu0  ;;  %v294_v14 = vpop.f32.mrf.mxu1 }
 0x11d   :  { %v824_v11 = vmul.f32 -1.442695, %v217_v0  ;;  %v826_v15 = vmul.f32 -1.442695, %v294_v14 }
 0x11e   :  { %v219_v16 = vpop.f32.mrf.mxu0  ;;  %v296_v17 = vpop.f32.mrf.mxu1 }
 0x11f   :  { %922 = vpow2.f32 %v824_v11  ;;  %v825_v18 = vmul.f32 -1.442695, %v219_v16  ;;  %v827_v19 = vmul.f32 -1.442695, %v296_v17 }
 0x120   :  { %924 = vpow2.f32 %v826_v15 }
 0x121   :  { %926 = vpow2.f32 %v825_v18 }
 0x122   :  { %928 = vpow2.f32 %v827_v19 }
 0x126   :  { %v915_v20 = vpop.eup %914 }
 0x127   :  { %v917_v21 = vpop.eup %916  ;;  %v541_v22 = vadd.f32 1.0, %v915_v20 }
 0x128   :  { %v919_v23 = vpop.eup %918  ;;  %v543_v24 = vadd.f32 1.0, %v917_v21 }
 0x129   :  { %v921_v25 = vpop.eup %920  ;;  %930 = vrcp.f32 %v541_v22  ;;  %v542_v26 = vadd.f32 1.0, %v919_v23 }
 0x12a   :  { %932 = vrcp.f32 %v543_v24  ;;  %v544_v27 = vadd.f32 1.0, %v921_v25 }
 0x12b   :  { %934 = vrcp.f32 %v542_v26 }
 0x12c   :  { %v923_v28 = vpop.eup %922  ;;  %936 = vrcp.f32 %v544_v27 }
 0x12d   :  { %v925_v29 = vpop.eup %924  ;;  %v545_v30 = vadd.f32 1.0, %v923_v28 }
 0x12e   :  { %v927_v31 = vpop.eup %926  ;;  %v547_v32 = vadd.f32 1.0, %v925_v29 }
 0x12f   :  { %v929_v33 = vpop.eup %928  ;;  %938 = vrcp.f32 %v545_v30  ;;  %v546_v34 = vadd.f32 1.0, %v927_v31 }
 0x130   :  { %940 = vrcp.f32 %v547_v32  ;;  %v548_v35 = vadd.f32 1.0, %v929_v33 }
 0x131   :  { %942 = vrcp.f32 %v546_v34 }
 0x132   :  { %944 = vrcp.f32 %v548_v35 }
 0x136   :  { %v931_v36 = vpop.eup %930 }
 0x137   :  { %v933_v37 = vpop.eup %932  ;;  %v565_v41 = vmul.f32 %v931_v36, %v211_v6 }
 0x138   :  { %v935_v38 = vpop.eup %934  ;;  %v567_v42 = vmul.f32 %v933_v37, %v288_v7 }
 0x139   :  { %v937_v39 = vpop.eup %936  ;;  %v566_v40 = vmul.f32 %v935_v38, %v213_v10 }
 0x13a   :  { %v568_v43 = vmul.f32 %v937_v39, %v290_v12  ;;  %v429_v44 = vpop.f32.mrf.mxu0  ;;  %v506_v45 = vpop.f32.mrf.mxu1 }
 0x13b   :  { %v573_v54 = vmul.f32 %v565_v41, %v429_v44  ;;  %v575_v55 = vmul.f32 %v567_v42, %v506_v45 }
 0x13c   :  { %v939_v46 = vpop.eup %938  ;;  %v431_v47 = vpop.f32.mrf.mxu0 }
 0x13d   :  { %v508_v48 = vpop.f32.mrf.mxu1  ;;  %v941_v49 = vpop.eup %940  ;;  %v574_v50 = vmul.f32 %v566_v40, %v431_v47  ;;  %v569_v53 = vmul.f32 %v939_v46, %v217_v0 }
 0x13e   :  { %v576_v51 = vmul.f32 %v568_v43, %v508_v48  ;;  %v943_v52 = vpop.eup %942  ;;  %v435_v56 = vpop.f32.mrf.mxu0  ;;  %v571_v59 = vmul.f32 %v941_v49, %v294_v14 }
 0x13f   :  { %v512_v57 = vpop.f32.mrf.mxu1  ;;  %v945_v58 = vpop.eup %944  ;;  %v570_v60 = vmul.f32 %v943_v52, %v219_v16  ;;  %711 = vmatprep.mubr.f32.mxu0 %v574_v50  ;;  %v577_v3 = vmul.f32 %v569_v53, %v435_v56 }
 0x140   :  { %786 = vmatprep.mubr.f32.mxu1 %v576_v51  ;;  %v572_v61 = vmul.f32 %v945_v58, %v296_v17  ;;  %v437_v62 = vpop.f32.mrf.mxu0  ;;  %712 = vmatmul.mubr.f32.vlgmr.msra.gmra.mxu0 %v573_v54  ;;  %v579_v5 = vmul.f32 %v571_v59, %v512_v57 }
 0x141   :  { %787 = vmatmul.mubr.f32.vlgmr.msra.gmra.mxu1 %v575_v55  ;;  %v578_v63 = vmul.f32 %v570_v60, %v437_v62  ;;  %v514_v1 = vpop.f32.mrf.mxu1 }
 0x142   :  { %v580_v4 = vmul.f32 %v572_v61, %v514_v1 }
 0x143   :  { %716 = vmatprep.mubr.f32.mxu0 %v578_v63 }
 0x144   :  { %791 = vmatprep.mubr.f32.mxu1 %v580_v4  ;;  %717 = vmatmul.mubr.f32.gmra.mxu0 %v577_v3 }
 0x145   :  { %792 = vmatmul.mubr.f32.gmra.mxu1 %v579_v5 }
 0x200   :  { %v860_v6 = vpop.f32.mrf.mxu0 }
 0x201   :  { %v898_v7 = vpop.f32.mrf.mxu1 }
 0x202   :  { %v861_v8 = vpop.f32.mrf.mxu0 }
 0x203   :  { %v899_v9 = vpop.f32.mrf.mxu1  ;;  %v862_v10 = vadd.f32 %v861_v8, %v860_v6 }
 0x204   :  { %v900_v12 = vadd.f32 %v899_v9, %v898_v7  ;;  %v863_v2 = vpop.f32.mrf.mxu0 }
 0x205   :  { %v901_v0 = vpop.f32.mrf.mxu1 }
 0x206   :  { %v789_v13 = vadd.f32 %v900_v12, %v862_v10  ;;  %v864_v14 = vpop.f32.mrf.mxu0 }
 0x207   :  { %v865_v11 = vadd.f32 %v864_v14, %v863_v2  ;;  %v902_v15 = vpop.f32.mrf.mxu1 }
 0x208   :  { %v903_v16 = vadd.f32 %v902_v15, %v901_v0  ;;  %799 = vst [vmem:[#allocation10] sm:$0xff] %v789_v13 }
 0x20a   :  { %v794_v17 = vadd.f32 %v903_v16, %v865_v11 }
 0x20c   :  { %800 = vst [vmem:[#allocation10 + $0x8] sm:$0xff] %v794_v17 }
 0x20d   :  { %1037 = shalt.err (!%p1034_p10)
}
 0x20e   :  { %812 = dma.vmem_to_hbm [thread:$0]  %s807_s3, 256, %s1143_s4, [#allocation4], %s1058_s25, %s1058_s25, %s1059_s26  }
 0x20f   :  { %1052 = dma.done.wait [#allocation4], 256  }
 0x210   :  { %1053 = vsyncadd [#allocation4], 4294967040 }
 0x211   :  { %816 = vsyncpa [#allocation3], 1 }
 0x212   :  { %817 = vsyncpa [#allocation6], 1 }
 0x213   :  { %818 = vsyncpa [#allocation9], 1 }
 0x214   :  { %819 = vsyncpa [#allocation4], 1 }

</bundles_post_ra>
